<compile_context>
chip_gen: v7x
topology: tpu7x:2x2x1
jax: 0.10.0
libtpu: 0.0.40
codegen_flags: <defaults>
</compile_context>

<pallas_src>
import functools

import jax
import jax.numpy as jnp
from jax.experimental import pallas as pl
from jax.experimental.pallas import tpu as pltpu

LANE = 128     # lane width (last dim of every vreg / weight slab)
SUBLANE = 8    # f32 sublane count


def _round_up(x, m):
    return (x + m - 1) // m * m


def dqn_kernel(x_ref, w_ref, b_ref, o_ref, *, row_ranges):
    """One batch-tile of the whole 4-layer MLP.

    x_ref : (TB, IN1P)      padded input tile
    w_ref : (ROWS, 128)     packed, zero-padded weights (resident across grid)
    b_ref : (8, 128)        packed, zero-padded biases  (resident across grid)
    o_ref : (TB, 128)       lane-dense padded output tile
    row_ranges: four static (start, stop) row ranges into w_ref (tile-aligned).
    """
    (r1a, r1b), (r2a, r2b), (r3a, r3b), (r4a, r4b) = row_ranges

    h = x_ref[...]  # already f32, no redundant cast

    # fc1 + ReLU
    h = jnp.dot(h, w_ref[r1a:r1b, :], preferred_element_type=jnp.float32) + b_ref[0:1, :]
    h = jnp.maximum(h, 0.0)

    # fc2 + ReLU
    h = jnp.dot(h, w_ref[r2a:r2b, :], preferred_element_type=jnp.float32) + b_ref[1:2, :]
    h = jnp.maximum(h, 0.0)

    # fc3 + ReLU
    h = jnp.dot(h, w_ref[r3a:r3b, :], preferred_element_type=jnp.float32) + b_ref[2:3, :]
    h = jnp.maximum(h, 0.0)

    # fc4 (no activation)
    h = jnp.dot(h, w_ref[r4a:r4b, :], preferred_element_type=jnp.float32) + b_ref[3:4, :]

    o_ref[...] = h  # lane-dense (TB, 128) store, no masking


def pack_params(params, state_dim):
    """Pack ((W,b) x 4) with W:(in,out), b:(out,) into two zero-padded VMEM slabs.

    Every layer's input dim is padded to its slab row count (8-row aligned) and
    every output dim is padded to 128 lanes with zeros.
    """
    in1p = _round_up(state_dim, SUBLANE)
    row_counts = [in1p, LANE, LANE, LANE]   # fc1 rows, fc2 rows, fc3 rows, fc4 rows
    row_ranges = []
    rows = 0
    for n in row_counts:
        row_ranges.append((rows, rows + n))
        rows += n

    w_slab = jnp.zeros((rows, LANE), jnp.float32)
    b_slab = jnp.zeros((SUBLANE, LANE), jnp.float32)
    for i, ((w, b), (ra, _)) in enumerate(zip(params, row_ranges)):
        fin, fout = w.shape
        assert fin <= row_counts[i] and fout <= LANE, "layer exceeds packed slab"
        w_slab = w_slab.at[ra:ra + fin, :fout].set(w.astype(jnp.float32))
        b_slab = b_slab.at[i, :fout].set(b.reshape(-1).astype(jnp.float32))
    return w_slab, b_slab, tuple(row_ranges)


def dqn_forward(x, params, *, block_b=512):
    """x: (B, state_dim) f32. params: ((W1,b1),...,(W4,b4)), W:(in,out), b:(out,)."""
    B, state_dim = x.shape
    action_dim = params[-1][0].shape[1]
    assert action_dim <= LANE, "action_dim must fit in one 128-lane slab"
    in1p = _round_up(state_dim, SUBLANE)

    w_slab, b_slab, row_ranges = pack_params(params, state_dim)

    # Batch tiling: whole-problem for small B, tiles of `block_b` rows for big B
    # (marked "parallel" so v7x can split tiles across its two TensorCores).
    tb = min(block_b, _round_up(B, SUBLANE))
    b_pad = _round_up(B, tb)

    x_p = jnp.zeros((b_pad, in1p), jnp.float32).at[:B, :state_dim].set(
        x.astype(jnp.float32))

    cost = pl.CostEstimate(
        flops=2 * b_pad * (in1p * LANE + 3 * LANE * LANE),
        transcendentals=0,
        bytes_accessed=(x_p.size + b_pad * LANE + w_slab.size + b_slab.size) * 4,
    )

    kernel = functools.partial(dqn_kernel, row_ranges=row_ranges)

    out_padded = pl.pallas_call(
        kernel,
        out_shape=jax.ShapeDtypeStruct((b_pad, LANE), jnp.float32),
        grid=(b_pad // tb,),
        in_specs=[
            pl.BlockSpec((tb, in1p), lambda i: (i, 0)),        # x: tiled over batch
            pl.BlockSpec(w_slab.shape, lambda i: (0, 0)),      # weights: resident
            pl.BlockSpec(b_slab.shape, lambda i: (0, 0)),      # biases:  resident
        ],
        out_specs=pl.BlockSpec((tb, LANE), lambda i: (i, 0)),
        compiler_params=pltpu.CompilerParams(dimension_semantics=("parallel",)),
        cost_estimate=cost,
    )(x_p, w_slab, b_slab)

    return out_padded[:B, :action_dim]


def init_linear(key, in_features, out_features):
    # PyTorch nn.Linear default init: U(-1/sqrt(fan_in), 1/sqrt(fan_in)).
    kw, kb = jax.random.split(key)
    bound = 1.0 / jnp.sqrt(jnp.float32(in_features))
    w = jax.random.uniform(kw, (in_features, out_features), jnp.float32, -bound, bound)
    b = jax.random.uniform(kb, (out_features,), jnp.float32, -bound, bound)
    return w, b


if __name__ == "__main__":
    state_dim = 8
    action_dim = 4
    batch = 64  # matches the module's batch_size; amortizes per-call overhead

    root = jax.random.PRNGKey(0)
    k_x, k1, k2, k3, k4 = jax.random.split(root, 5)

    params = (
        init_linear(k1, state_dim, 32),
        init_linear(k2, 32, 32),
        init_linear(k3, 32, 16),
        init_linear(k4, 16, action_dim),
    )

    x = jax.random.normal(k_x, (batch, state_dim), dtype=jnp.float32)

    out = dqn_forward(x, params)
    out = jax.block_until_ready(out)

    # Pure-JAX reference (same math as the PyTorch forward).
    def ref(x, params):
        (w1, b1), (w2, b2), (w3, b3), (w4, b4) = params
        h = jnp.maximum(x @ w1 + b1, 0.0)
        h = jnp.maximum(h @ w2 + b2, 0.0)
        h = jnp.maximum(h @ w3 + b3, 0.0)
        return h @ w4 + b4

    expected = ref(x, params)
    assert out.shape == (batch, action_dim)
    assert jnp.allclose(out, expected, atol=1e-5, rtol=1e-5)

    print("KERNEL_OK")
</pallas_src>

<mosaic_0001>
module attributes {stable_mosaic.version = 11 : i64} {
  func.func @dqn_kernel(%arg0: i32, %arg1: memref<64x8xf32, #tpu.memory_space<vmem>>, %arg2: memref<392x128xf32, #tpu.memory_space<vmem>>, %arg3: memref<8x128xf32, #tpu.memory_space<vmem>>, %arg4: memref<64x128xf32, #tpu.memory_space<vmem>>) attributes {dimension_semantics = [#tpu.dimension_semantics<parallel>], iteration_bounds = array<i64: 1>, scalar_prefetch = 0 : i64, scratch_operands = 0 : i64, tpu.core_type = #tpu.core_type<tc>, window_params = [{transform_indices = @transform_0, window_bounds = array<i64: 64, 8>}, {pipeline_mode = #tpu.pipeline_mode<synchronous>, transform_indices = @transform_1, window_bounds = array<i64: 392, 128>}, {pipeline_mode = #tpu.pipeline_mode<synchronous>, transform_indices = @transform_2, window_bounds = array<i64: 8, 128>}, {transform_indices = @transform_3, window_bounds = array<i64: 64, 128>}]} {
    %c0 = arith.constant 0 : index
    %c0_0 = arith.constant 0 : index
    %0 = vector.load %arg1[%c0, %c0_0] : memref<64x8xf32, #tpu.memory_space<vmem>>, vector<64x8xf32>
    %c0_1 = arith.constant 0 : index
    %c0_2 = arith.constant 0 : index
    %1 = vector.load %arg2[%c0_1, %c0_2] : memref<392x128xf32, #tpu.memory_space<vmem>>, vector<8x128xf32>
    %cst = arith.constant dense<0.000000e+00> : vector<64x128xf32>
    %2 = tpu.matmul %0, %1, %cst {dimension_numbers = #tpu.dot_dimension_numbers<[1], [0], [0], [1], [0, 0, 1, 1], [], []>} : vector<64x8xf32>, vector<8x128xf32>, vector<64x128xf32> -> vector<64x128xf32>
    %c0_3 = arith.constant 0 : index
    %c0_4 = arith.constant 0 : index
    %3 = vector.load %arg3[%c0_3, %c0_4] : memref<8x128xf32, #tpu.memory_space<vmem>>, vector<1x128xf32>
    %4 = vector.broadcast %3 : vector<1x128xf32> to vector<64x128xf32>
    %5 = arith.addf %2, %4 : vector<64x128xf32>
    %cst_5 = arith.constant 0.000000e+00 : f32
    %6 = vector.broadcast %cst_5 : f32 to vector<64x128xf32>
    %7 = arith.maximumf %5, %6 : vector<64x128xf32>
    %c8 = arith.constant 8 : index
    %c0_6 = arith.constant 0 : index
    %8 = vector.load %arg2[%c8, %c0_6] : memref<392x128xf32, #tpu.memory_space<vmem>>, vector<128x128xf32>
    %cst_7 = arith.constant dense<0.000000e+00> : vector<64x128xf32>
    %9 = tpu.matmul %7, %8, %cst_7 {dimension_numbers = #tpu.dot_dimension_numbers<[1], [0], [0], [1], [0, 0, 1, 1], [], []>} : vector<64x128xf32>, vector<128x128xf32>, vector<64x128xf32> -> vector<64x128xf32>
    %c1 = arith.constant 1 : index
    %c0_8 = arith.constant 0 : index
    %10 = vector.load %arg3[%c1, %c0_8] : memref<8x128xf32, #tpu.memory_space<vmem>>, vector<1x128xf32>
    %11 = vector.broadcast %10 : vector<1x128xf32> to vector<64x128xf32>
    %12 = arith.addf %9, %11 : vector<64x128xf32>
    %cst_9 = arith.constant 0.000000e+00 : f32
    %13 = vector.broadcast %cst_9 : f32 to vector<64x128xf32>
    %14 = arith.maximumf %12, %13 : vector<64x128xf32>
    %c136 = arith.constant 136 : index
    %c0_10 = arith.constant 0 : index
    %15 = vector.load %arg2[%c136, %c0_10] : memref<392x128xf32, #tpu.memory_space<vmem>>, vector<128x128xf32>
    %cst_11 = arith.constant dense<0.000000e+00> : vector<64x128xf32>
    %16 = tpu.matmul %14, %15, %cst_11 {dimension_numbers = #tpu.dot_dimension_numbers<[1], [0], [0], [1], [0, 0, 1, 1], [], []>} : vector<64x128xf32>, vector<128x128xf32>, vector<64x128xf32> -> vector<64x128xf32>
    %c2 = arith.constant 2 : index
    %c0_12 = arith.constant 0 : index
    %17 = vector.load %arg3[%c2, %c0_12] : memref<8x128xf32, #tpu.memory_space<vmem>>, vector<1x128xf32>
    %18 = vector.broadcast %17 : vector<1x128xf32> to vector<64x128xf32>
    %19 = arith.addf %16, %18 : vector<64x128xf32>
    %cst_13 = arith.constant 0.000000e+00 : f32
    %20 = vector.broadcast %cst_13 : f32 to vector<64x128xf32>
    %21 = arith.maximumf %19, %20 : vector<64x128xf32>
    %c264 = arith.constant 264 : index
    %c0_14 = arith.constant 0 : index
    %22 = vector.load %arg2[%c264, %c0_14] : memref<392x128xf32, #tpu.memory_space<vmem>>, vector<128x128xf32>
    %cst_15 = arith.constant dense<0.000000e+00> : vector<64x128xf32>
    %23 = tpu.matmul %21, %22, %cst_15 {dimension_numbers = #tpu.dot_dimension_numbers<[1], [0], [0], [1], [0, 0, 1, 1], [], []>} : vector<64x128xf32>, vector<128x128xf32>, vector<64x128xf32> -> vector<64x128xf32>
    %c3 = arith.constant 3 : index
    %c0_16 = arith.constant 0 : index
    %24 = vector.load %arg3[%c3, %c0_16] : memref<8x128xf32, #tpu.memory_space<vmem>>, vector<1x128xf32>
    %25 = vector.broadcast %24 : vector<1x128xf32> to vector<64x128xf32>
    %26 = arith.addf %23, %25 : vector<64x128xf32>
    %c0_17 = arith.constant 0 : index
    %c0_18 = arith.constant 0 : index
    %27 = vector.load %arg4[%c0_17, %c0_18] : memref<64x128xf32, #tpu.memory_space<vmem>>, vector<64x128xf32>
    tpu.vector_store %arg4[%c0_17, %c0_18], %26 {strides = array<i32>} : memref<64x128xf32, #tpu.memory_space<vmem>>, vector<64x128xf32>,
    return
  }
  func.func @transform_0(%arg0: i32) -> (i32, i32) {
    %c0_i32 = arith.constant 0 : i32
    %c0_i32_0 = arith.constant 0 : i32
    return %arg0, %c0_i32 : i32, i32
  }
  func.func @transform_1(%arg0: i32) -> (i32, i32) {
    %c0_i32 = arith.constant 0 : i32
    %c0_i32_0 = arith.constant 0 : i32
    %c0_i32_1 = arith.constant 0 : i32
    return %c0_i32, %c0_i32_0 : i32, i32
  }
  func.func @transform_2(%arg0: i32) -> (i32, i32) {
    %c0_i32 = arith.constant 0 : i32
    %c0_i32_0 = arith.constant 0 : i32
    %c0_i32_1 = arith.constant 0 : i32
    return %c0_i32, %c0_i32_0 : i32, i32
  }
  func.func @transform_3(%arg0: i32) -> (i32, i32) {
    %c0_i32 = arith.constant 0 : i32
    %c0_i32_0 = arith.constant 0 : i32
    return %arg0, %c0_i32 : i32, i32
  }
}

</mosaic_0001>

<bundles_post_ra>
// kernel: tpu_custom_call.1
= control target key start
LH: loop header
LB: loop body
LE: loop exit
PB: predicated region body
PF: predicated region fallthrough
CT: control target
= control target key end

     0   :  { %8 = vsyncpa [#allocation3], 0  ;;  %s1101_s0 = inlined_call_operand.vmem [shape: f32[64,8], index: 0, kind: input, shape index: {}]   ;;  %s1102_s1 = inlined_call_operand.hbm [shape: f32[392,128], index: 1, kind: input, shape index: {}]   ;;  %s1103_s2 = inlined_call_operand.vmem [shape: f32[8,128], index: 2, kind: input, shape index: {}]   ;;  %s1104_s3 = inlined_call_operand.hbm [shape: f32[64,128], index: 3, kind: output, shape index: {}]  }
   0x1   :  { %9 = vsyncpa [#allocation4], 0  ;;  %s1003_s12 = smov [#allocation2]   ;;  %s955_s16 = scalar_lea.hbm %s1102_s1, 6272 }
   0x2   :  { %s17_s13 = sshll.u32 %s1003_s12, 4  ;;  %p956_p0 = scmp.ne.s32.totalorder %s1102_s1, %s955_s16  ;;  %s18_s13 = int_to_ptr.vmem [resolvable:$true] %s17_s13 }
   0x3   :  { %p959_p1 = scmp.lt.u32.totalorder %s955_s16, %s1102_s1 }
   0x5   :  { %p961_p2 = pnand %p959_p1, %p956_p0 }
   0x7   :  { %964 = shalt.err (!%p961_p2)
}
   0x8   :  { %s965_s21 = scalar_lea.vmem %s18_s13, 6272  ;;  %p970_p4 = scmp.lt.s32.totalorder %s18_s13, %s18_s13 }
   0x9   :  { %p966_p3 = scmp.ne.s32.totalorder %s18_s13, %s965_s21  ;;  %p971_p5 = scmp.lt.s32.totalorder %s965_s21, %s965_s21 }
   0xb   :  { %p972_p6 = por %p971_p5, %p970_p4 }
   0xd   :  { %p973_p7 = pnand %p972_p6, %p966_p3 }
   0xf   :  { %976 = shalt.err (!%p973_p7)
}
  0x10   :  { %s1004_s22 = smov 128   ;;  %s1005_s23 = smov 8  }
  0x11   :  { %23 = dma.hbm_to_vmem [thread:$0]  %s1102_s1, 6272, %s18_s13, [#allocation3], %s1004_s22, %s1004_s22, %s1005_s23  }
  0x12   :  { %999 = dma.done.wait [#allocation3], 6272  }
  0x13   :  { %1000 = vsyncadd [#allocation3], 4294961024  ;;  %vm43_vm0 = vcmask 64512   ;;  %v37_v0 = vld [vmem:[#allocation2] sm:$0xff]  ;;  %v29_v1 = vld [vmem:[%s1101_s0] sm:$0xff]  ;;  %s1006_s21 = smov [#allocation5]  }
  0x14   :  { %v30_v2 = vld [vmem:[%s1101_s0 + $0x8] sm:$0xff]  ;;  %693 = vmatprep.subr.mxu0 %v37_v0  ;;  %695 = vmatprep.mubr.msk.f32.mxu0 %vm43_vm0, %v29_v1  ;;  %v31_v3 = vld [vmem:[%s1101_s0 + $0x10] sm:$0xff]  ;;  %v182_v5 = vld [vmem:[#allocation2 + $0x10] sm:$0xff]  ;;  %s588_s24 = sshll.u32 %s1006_s21, 4  ;;  %s589_s24 = int_to_ptr.vmem [resolvable:$true] %s588_s24 }
  0x15   :  { %694 = vmatpush3.msra.mxu0 %v37_v0  ;;  %v181_v4 = vld [vmem:[#allocation2 + $0x8] sm:$0xff]  ;;  %v183_v6 = vld [vmem:[#allocation2 + $0x18] sm:$0xff]  ;;  %v32_v7 = vld [vmem:[%s1101_s0 + $0x18] sm:$0xff]  ;;  %p982_p9 = scmp.lt.s32.totalorder %s589_s24, %s589_s24 }
  0x16   :  { %696 = vmatmul.mubr.msk.f32.vlgmr.msra.gmra.mrb[0].mxu0 %vm43_vm0, %v30_v2  ;;  %v839_v8 = vpack.c.bf16 %v182_v5, %v181_v4  ;;  %v184_v9 = vld [vmem:[#allocation2 + $0x20] sm:$0xff]  ;;  %v33_v10 = vld [vmem:[%s1101_s0 + $0x20] sm:$0xff]  ;;  %v185_v12 = vld [vmem:[#allocation2 + $0x28] sm:$0xff] }
  0x17   :  { %698 = vmatprep.mubr.msk.f32.mxu0 %vm43_vm0, %v31_v3  ;;  %v843_v11 = vpack.c.bf16 %v184_v9, %v183_v6  ;;  %v186_v13 = vld [vmem:[#allocation2 + $0x30] sm:$0xff]  ;;  %v34_v14 = vld [vmem:[%s1101_s0 + $0x28] sm:$0xff]  ;;  %v35_v16 = vld [vmem:[%s1101_s0 + $0x30] sm:$0xff] }
  0x18   :  { %840 = vmatprep.subr.bf16.mxu1 %v839_v8  ;;  %v847_v15 = vpack.c.bf16 %v186_v13, %v185_v12  ;;  %v187_v17 = vld [vmem:[#allocation2 + $0x38] sm:$0xff]  ;;  %v188_v18 = vld [vmem:[#allocation2 + $0x40] sm:$0xff]  ;;  %v36_v19 = vld [vmem:[%s1101_s0 + $0x38] sm:$0xff] }
  0x19   :  { %842 = vmatpush3.bf16.msra.mxu1 %v839_v8  ;;  %v851_v20 = vpack.c.bf16 %v188_v18, %v187_v17  ;;  %v189_v21 = vld [vmem:[#allocation2 + $0x48] sm:$0xff]  ;;  %v190_v22 = vld [vmem:[#allocation2 + $0x50] sm:$0xff]  ;;  %v191_v24 = vld [vmem:[#allocation2 + $0x58] sm:$0xff] }
  0x1a   :  { %699 = vmatmul.mubr.msk.f32.gmra.mrb[2].mxu0 %vm43_vm0, %v32_v7  ;;  %844 = vmatprep.subr.bf16.mxu1 %v843_v11  ;;  %v855_v23 = vpack.c.bf16 %v190_v22, %v189_v21  ;;  %v192_v25 = vld [vmem:[#allocation2 + $0x60] sm:$0xff]  ;;  %v193_v27 = vld [vmem:[#allocation2 + $0x68] sm:$0xff]  ;;  %v194_v28 = vld [vmem:[#allocation2 + $0x70] sm:$0xff] }
  0x1b   :  { %701 = vmatprep.mubr.msk.f32.mxu0 %vm43_vm0, %v33_v10  ;;  %v859_v26 = vpack.c.bf16 %v192_v25, %v191_v24  ;;  %v863_v29 = vpack.c.bf16 %v194_v28, %v193_v27  ;;  %v195_v30 = vld [vmem:[#allocation2 + $0x78] sm:$0xff]  ;;  %v196_v31 = vld [vmem:[#allocation2 + $0x80] sm:$0xff]  ;;  %v315_v33 = vld [vmem:[#allocation2 + $0x88] sm:$0xff] }
  0x1c   :  { %v867_v32 = vpack.c.bf16 %v196_v31, %v195_v30  ;;  %v316_v34 = vld [vmem:[#allocation2 + $0x90] sm:$0xff]  ;;  %v317_v35 = vld [vmem:[#allocation2 + $0x98] sm:$0xff]  ;;  %v318_v37 = vld [vmem:[#allocation2 + $0xa0] sm:$0xff] }
  0x1d   :  { %846 = vmatpush3.bf16.msra.mxu1 %v843_v11  ;;  %v871_v36 = vpack.c.bf16 %v316_v34, %v315_v33  ;;  %v875_v38 = vpack.c.bf16 %v318_v37, %v317_v35  ;;  %v319_v39 = vld [vmem:[#allocation2 + $0xa8] sm:$0xff]  ;;  %v320_v40 = vld [vmem:[#allocation2 + $0xb0] sm:$0xff]  ;;  %v321_v42 = vld [vmem:[#allocation2 + $0xb8] sm:$0xff] }
  0x1e   :  { %702 = vmatmul.mubr.msk.f32.gmra.mrb[4].mxu0 %vm43_vm0, %v34_v14  ;;  %848 = vmatprep.subr.bf16.mxu1 %v847_v15  ;;  %v879_v41 = vpack.c.bf16 %v320_v40, %v319_v39  ;;  %v322_v43 = vld [vmem:[#allocation2 + $0xc0] sm:$0xff]  ;;  %v323_v45 = vld [vmem:[#allocation2 + $0xc8] sm:$0xff]  ;;  %v324_v46 = vld [vmem:[#allocation2 + $0xd0] sm:$0xff] }
  0x1f   :  { %704 = vmatprep.mubr.msk.f32.mxu0 %vm43_vm0, %v35_v16  ;;  %872 = vmatprep.subr.bf16.mxu0 %v871_v36  ;;  %v883_v44 = vpack.c.bf16 %v322_v43, %v321_v42  ;;  %v887_v47 = vpack.c.bf16 %v324_v46, %v323_v45  ;;  %v325_v48 = vld [vmem:[#allocation2 + $0xd8] sm:$0xff]  ;;  %v326_v49 = vld [vmem:[#allocation2 + $0xe0] sm:$0xff]  ;;  %v327_v51 = vld [vmem:[#allocation2 + $0xe8] sm:$0xff] }
  0x20   :  { %874 = vmatpush3.bf16.msra.mxu0 %v871_v36  ;;  %v891_v50 = vpack.c.bf16 %v326_v49, %v325_v48  ;;  %v328_v52 = vld [vmem:[#allocation2 + $0xf0] sm:$0xff]  ;;  %v600_v54 = vld [vmem:[%s1103_s2] ss:$0 sm:$0xff]  ;;  %v330_v16 = vld [vmem:[#allocation2 + $0x100] sm:$0xff] }
  0x21   :  { %850 = vmatpush3.bf16.msra.mxu1 %v847_v15  ;;  %876 = vmatprep.subr.bf16.mxu0 %v875_v38  ;;  %v895_v53 = vpack.c.bf16 %v328_v52, %v327_v51  ;;  %v329_v15 = vld [vmem:[#allocation2 + $0xf8] sm:$0xff]  ;;  %v449_v18 = vld [vmem:[#allocation2 + $0x108] sm:$0xff]  ;;  %v452_v22 = vld [vmem:[#allocation2 + $0x120] sm:$0xff] }
  0x22   :  { %705 = vmatmul.mubr.msk.f32.gmra.mrb[6].mxu0 %vm43_vm0, %v36_v19  ;;  %852 = vmatprep.subr.bf16.mxu1 %v851_v20  ;;  %v899_v17 = vpack.c.bf16 %v330_v16, %v329_v15  ;;  %v450_v19 = vld [vmem:[#allocation2 + $0x110] sm:$0xff]  ;;  %v453_v24 = vld [vmem:[#allocation2 + $0x128] sm:$0xff]  ;;  %v455_v27 = vld [vmem:[#allocation2 + $0x138] sm:$0xff] }
  0x23   :  { %v903_v21 = vpack.c.bf16 %v450_v19, %v449_v18  ;;  %v454_v25 = vld [vmem:[#allocation2 + $0x130] sm:$0xff]  ;;  %v456_v28 = vld [vmem:[#allocation2 + $0x140] sm:$0xff]  ;;  %v457_v30 = vld [vmem:[#allocation2 + $0x148] sm:$0xff] }
  0x24   :  { %878 = vmatpush3.bf16.msra.mxu0 %v875_v38  ;;  %v458_v31 = vld [vmem:[#allocation2 + $0x150] sm:$0xff]  ;;  %v459_v33 = vld [vmem:[#allocation2 + $0x158] sm:$0xff]  ;;  %v460_v34 = vld [vmem:[#allocation2 + $0x160] sm:$0xff] }
  0x25   :  { %854 = vmatpush3.bf16.msra.mxu1 %v851_v20  ;;  %880 = vmatprep.subr.bf16.mxu0 %v879_v41  ;;  %v451_v20 = vld [vmem:[#allocation2 + $0x118] sm:$0xff]  ;;  %v923_v35 = vpack.c.bf16 %v460_v34, %v459_v33  ;;  %v461_v36 = vld [vmem:[#allocation2 + $0x168] sm:$0xff]  ;;  %v462_v37 = vld [vmem:[#allocation2 + $0x170] sm:$0xff] }
  0x26   :  { %856 = vmatprep.subr.bf16.mxu1 %v855_v23  ;;  %v927_v38 = vpack.c.bf16 %v462_v37, %v461_v36  ;;  %v609_v39 = vld [vmem:[%s1103_s2 + $0x1] ss:$0 sm:$0xff] }
  0x28   :  { %882 = vmatpush3.bf16.msra.mxu0 %v879_v41 }
  0x29   :  { %858 = vmatpush3.bf16.msra.mxu1 %v855_v23  ;;  %884 = vmatprep.subr.bf16.mxu0 %v883_v44  ;;  %v907_v23 = vpack.c.bf16 %v452_v22, %v451_v20 }
  0x2a   :  { %860 = vmatprep.subr.bf16.mxu1 %v859_v26 }
  0x2c   :  { %886 = vmatpush3.bf16.msra.mxu0 %v883_v44 }
  0x2d   :  { %862 = vmatpush3.bf16.msra.mxu1 %v859_v26  ;;  %888 = vmatprep.subr.bf16.mxu0 %v887_v47  ;;  %v911_v26 = vpack.c.bf16 %v454_v25, %v453_v24 }
  0x2e   :  { %864 = vmatprep.subr.bf16.mxu1 %v863_v29 }
  0x30   :  { %890 = vmatpush3.bf16.msra.mxu0 %v887_v47 }
  0x31   :  { %866 = vmatpush3.bf16.msra.mxu1 %v863_v29  ;;  %892 = vmatprep.subr.bf16.mxu0 %v891_v50  ;;  %v915_v29 = vpack.c.bf16 %v456_v28, %v455_v27  ;;  %v611_v28 = vld [vmem:[%s1103_s2 + $0x3] ss:$0 sm:$0xff] }
  0x32   :  { %868 = vmatprep.subr.bf16.mxu1 %v867_v32 }
  0x34   :  { %894 = vmatpush3.bf16.msra.mxu0 %v891_v50 }
  0x35   :  { %870 = vmatpush3.bf16.msra.mxu1 %v867_v32  ;;  %896 = vmatprep.subr.bf16.mxu0 %v895_v53  ;;  %v919_v32 = vpack.c.bf16 %v458_v31, %v457_v30 }
  0x36   :  { %935 = vmatprep.subr.bf16.mxu1 %v903_v21 }
  0x38   :  { %898 = vmatpush3.bf16.msra.mxu0 %v895_v53 }
  0x39   :  { %900 = vmatprep.subr.bf16.mxu0 %v899_v17 }
  0x3c   :  { %902 = vmatpush3.bf16.msra.mxu0 %v899_v17 }
  0x3d   :  { %904 = vmatprep.subr.bf16.mxu0 %v903_v21 }
  0xe9   :  { %v697_v55 = vpop.f32.mrb[0].mxu0 }
  0xea   :  { %v140_v56 = vadd.f32 %v697_v55, %v600_v54  ;;  %v134_v57 = vpop.f32.mrb[1].mxu0 }
  0xeb   :  { %v135_v58 = vadd.f32 %v600_v54, %v134_v57 }
  0xec   :  { %v174_v61 = vmax.f32 %v140_v56, 0.0 }
  0xed   :  { %v700_v59 = vpop.f32.mrb[2].mxu0  ;;  %v173_v60 = vmax.f32 %v135_v58, 0.0 }
  0xee   :  { %v150_v62 = vadd.f32 %v700_v59, %v600_v54  ;;  %v144_v63 = vpop.f32.mrb[3].mxu0 }
  0xef   :  { %v145_v0 = vadd.f32 %v600_v54, %v144_v63  ;;  %739 = vmatprep.mubr.f32.mxu1 %v173_v60 }
  0xf0   :  { %740 = vmatmul.mubr.f32.vlgmr.msra.gmra.mrb[0].mxu1 %v174_v61  ;;  %v176_v3 = vmax.f32 %v150_v62, 0.0 }
  0xf1   :  { %v175_v1 = vmax.f32 %v145_v0, 0.0  ;;  %v703_v2 = vpop.f32.mrb[4].mxu0  ;;  %943 = vmatpush3.bf16.msra.mxu1 %v903_v21  ;;  %v463_v0 = vld [vmem:[#allocation2 + $0x178] sm:$0xff] }
  0xf2   :  { %v160_v4 = vadd.f32 %v703_v2, %v600_v54  ;;  %v154_v5 = vpop.f32.mrb[5].mxu0  ;;  %936 = vmatprep.subr.bf16.mxu1 %v907_v23 }
  0xf3   :  { %v155_v6 = vadd.f32 %v600_v54, %v154_v5  ;;  %742 = vmatprep.mubr.f32.mxu1 %v175_v1  ;;  %v464_v1 = vld [vmem:[#allocation2 + $0x180] sm:$0xff] }
  0xf4   :  { %743 = vmatmul.mubr.f32.gmra.mrb[2].mxu1 %v176_v3  ;;  %v178_v9 = vmax.f32 %v160_v4, 0.0  ;;  %v931_v2 = vpack.c.bf16 %v464_v1, %v463_v0  ;;  %v610_v3 = vld [vmem:[%s1103_s2 + $0x2] ss:$0 sm:$0xff]  ;;  %s977_s2 = scalar_lea.vmem %s589_s24, 1024 }
  0xf5   :  { %v177_v7 = vmax.f32 %v155_v6, 0.0  ;;  %v706_v8 = vpop.f32.mrb[6].mxu0  ;;  %944 = vmatpush3.bf16.msra.mxu1 %v907_v23  ;;  %p978_p8 = scmp.ne.s32.totalorder %s589_s24, %s977_s2  ;;  %p983_p10 = scmp.lt.s32.totalorder %s977_s2, %s977_s2 }
  0xf6   :  { %v170_v10 = vadd.f32 %v706_v8, %v600_v54  ;;  %v164_v11 = vpop.f32.mrb[7].mxu0  ;;  %937 = vmatprep.subr.bf16.mxu1 %v911_v26 }
  0xf7   :  { %v165_v12 = vadd.f32 %v600_v54, %v164_v11  ;;  %745 = vmatprep.mubr.f32.mxu1 %v177_v7  ;;  %p984_p11 = por %p983_p10, %p982_p9 }
  0xf8   :  { %746 = vmatmul.mubr.f32.gmra.mrb[4].mxu1 %v178_v9  ;;  %v180_v14 = vmax.f32 %v170_v10, 0.0 }
  0xf9   :  { %v179_v13 = vmax.f32 %v165_v12, 0.0  ;;  %945 = vmatpush3.bf16.msra.mxu1 %v911_v26  ;;  %p985_p12 = pnand %p984_p11, %p978_p8 }
  0xfa   :  { %938 = vmatprep.subr.bf16.mxu1 %v915_v29 }
  0xfb   :  { %748 = vmatprep.mubr.f32.mxu1 %v179_v13 }
  0xfc   :  { %749 = vmatmul.mubr.f32.gmra.mrb[6].mxu1 %v180_v14 }
  0xfd   :  { %946 = vmatpush3.bf16.msra.mxu1 %v915_v29 }
  0xfe   :  { %939 = vmatprep.subr.bf16.mxu1 %v919_v32 }
 0x101   :  { %947 = vmatpush3.bf16.msra.mxu1 %v919_v32 }
 0x102   :  { %940 = vmatprep.subr.bf16.mxu1 %v923_v35 }
 0x105   :  { %948 = vmatpush3.bf16.msra.mxu1 %v923_v35 }
 0x106   :  { %941 = vmatprep.subr.bf16.mxu1 %v927_v38 }
 0x109   :  { %949 = vmatpush3.bf16.msra.mxu1 %v927_v38 }
 0x10a   :  { %942 = vmatprep.subr.bf16.mxu1 %v931_v2 }
 0x10d   :  { %950 = vmatpush3.bf16.msra.mxu1 %v931_v2 }
 0x1c3   :  { %v741_v40 = vpop.f32.mrb[0].mxu1 }
 0x1c4   :  { %v274_v41 = vadd.f32 %v741_v40, %v609_v39  ;;  %v268_v42 = vpop.f32.mrb[1].mxu1 }
 0x1c5   :  { %v269_v43 = vadd.f32 %v609_v39, %v268_v42 }
 0x1c6   :  { %v308_v46 = vmax.f32 %v274_v41, 0.0 }
 0x1c7   :  { %v307_v44 = vmax.f32 %v269_v43, 0.0  ;;  %v744_v45 = vpop.f32.mrb[2].mxu1 }
 0x1c8   :  { %v284_v47 = vadd.f32 %v744_v45, %v609_v39  ;;  %v278_v48 = vpop.f32.mrb[3].mxu1 }
 0x1c9   :  { %v279_v49 = vadd.f32 %v609_v39, %v278_v48  ;;  %783 = vmatprep.mubr.f32.mxu0 %v307_v44 }
 0x1ca   :  { %784 = vmatmul.mubr.f32.vlgmr.msra.gmra.mrb[8].mxu0 %v308_v46  ;;  %v310_v52 = vmax.f32 %v284_v47, 0.0 }
 0x1cb   :  { %v309_v50 = vmax.f32 %v279_v49, 0.0  ;;  %v747_v51 = vpop.f32.mrb[4].mxu1  ;;  %906 = vmatpush3.bf16.msra.mxu0 %v903_v21 }
 0x1cc   :  { %v294_v53 = vadd.f32 %v747_v51, %v609_v39  ;;  %v288_v54 = vpop.f32.mrb[5].mxu1  ;;  %908 = vmatprep.subr.bf16.mxu0 %v907_v23 }
 0x1cd   :  { %v289_v55 = vadd.f32 %v609_v39, %v288_v54  ;;  %786 = vmatprep.mubr.f32.mxu0 %v309_v50 }
 0x1ce   :  { %787 = vmatmul.mubr.f32.gmra.mrb[10].mxu0 %v310_v52  ;;  %v312_v58 = vmax.f32 %v294_v53, 0.0 }
 0x1cf   :  { %v311_v56 = vmax.f32 %v289_v55, 0.0  ;;  %v750_v57 = vpop.f32.mrb[6].mxu1  ;;  %910 = vmatpush3.bf16.msra.mxu0 %v907_v23 }
 0x1d0   :  { %v304_v59 = vadd.f32 %v750_v57, %v609_v39  ;;  %v298_v60 = vpop.f32.mrb[7].mxu1  ;;  %912 = vmatprep.subr.bf16.mxu0 %v911_v26 }
 0x1d1   :  { %v299_v61 = vadd.f32 %v609_v39, %v298_v60  ;;  %789 = vmatprep.mubr.f32.mxu0 %v311_v56 }
 0x1d2   :  { %790 = vmatmul.mubr.f32.gmra.mrb[12].mxu0 %v312_v58  ;;  %v314_v63 = vmax.f32 %v304_v59, 0.0 }
 0x1d3   :  { %v313_v62 = vmax.f32 %v299_v61, 0.0  ;;  %914 = vmatpush3.bf16.msra.mxu0 %v911_v26 }
 0x1d4   :  { %916 = vmatprep.subr.bf16.mxu0 %v915_v29 }
 0x1d5   :  { %792 = vmatprep.mubr.f32.mxu0 %v313_v62 }
 0x1d6   :  { %793 = vmatmul.mubr.f32.gmra.mrb[14].mxu0 %v314_v63 }
 0x1d7   :  { %918 = vmatpush3.bf16.msra.mxu0 %v915_v29 }
 0x1d8   :  { %920 = vmatprep.subr.bf16.mxu0 %v919_v32 }
 0x1db   :  { %922 = vmatpush3.bf16.msra.mxu0 %v919_v32 }
 0x1dc   :  { %924 = vmatprep.subr.bf16.mxu0 %v923_v35 }
 0x1df   :  { %926 = vmatpush3.bf16.msra.mxu0 %v923_v35 }
 0x1e0   :  { %928 = vmatprep.subr.bf16.mxu0 %v927_v38 }
 0x1e3   :  { %930 = vmatpush3.bf16.msra.mxu0 %v927_v38 }
 0x1e4   :  { %932 = vmatprep.subr.bf16.mxu0 %v931_v2 }
 0x1e7   :  { %934 = vmatpush3.bf16.msra.mxu0 %v931_v2 }
 0x29d   :  { %v785_v4 = vpop.f32.mrb[8].mxu0 }
 0x29e   :  { %v408_v5 = vadd.f32 %v785_v4, %v610_v3  ;;  %v402_v6 = vpop.f32.mrb[9].mxu0 }
 0x29f   :  { %v403_v7 = vadd.f32 %v610_v3, %v402_v6 }
 0x2a0   :  { %v442_v10 = vmax.f32 %v408_v5, 0.0 }
 0x2a1   :  { %v441_v8 = vmax.f32 %v403_v7, 0.0  ;;  %v788_v9 = vpop.f32.mrb[10].mxu0 }
 0x2a2   :  { %v418_v11 = vadd.f32 %v788_v9, %v610_v3  ;;  %v412_v12 = vpop.f32.mrb[11].mxu0 }
 0x2a3   :  { %v413_v13 = vadd.f32 %v610_v3, %v412_v12  ;;  %827 = vmatprep.mubr.f32.mxu0 %v441_v8 }
 0x2a4   :  { %828 = vmatmul.mubr.f32.vlgmr.msra.gmra.mrb[16].mxu0 %v442_v10  ;;  %v444_v16 = vmax.f32 %v418_v11, 0.0 }
 0x2a5   :  { %v443_v14 = vmax.f32 %v413_v13, 0.0  ;;  %v791_v15 = vpop.f32.mrb[12].mxu0 }
 0x2a6   :  { %v428_v17 = vadd.f32 %v791_v15, %v610_v3  ;;  %v422_v18 = vpop.f32.mrb[13].mxu0 }
 0x2a7   :  { %v423_v19 = vadd.f32 %v610_v3, %v422_v18  ;;  %830 = vmatprep.mubr.f32.mxu1 %v443_v14 }
 0x2a8   :  { %831 = vmatmul.mubr.f32.vlgmr.msra.gmra.mrb[8].mxu1 %v444_v16  ;;  %v446_v22 = vmax.f32 %v428_v17, 0.0 }
 0x2a9   :  { %v445_v20 = vmax.f32 %v423_v19, 0.0  ;;  %v794_v21 = vpop.f32.mrb[14].mxu0 }
 0x2aa   :  { %v438_v23 = vadd.f32 %v794_v21, %v610_v3  ;;  %v432_v24 = vpop.f32.mrb[15].mxu0 }
 0x2ab   :  { %v433_v25 = vadd.f32 %v610_v3, %v432_v24  ;;  %833 = vmatprep.mubr.f32.mxu1 %v445_v20 }
 0x2ac   :  { %834 = vmatmul.mubr.f32.gmra.mrb[10].mxu1 %v446_v22  ;;  %v448_v27 = vmax.f32 %v438_v23, 0.0 }
 0x2ad   :  { %v447_v26 = vmax.f32 %v433_v25, 0.0 }
 0x2af   :  { %836 = vmatprep.mubr.f32.mxu1 %v447_v26 }
 0x2b0   :  { %837 = vmatmul.mubr.f32.gmra.mrb[12].mxu1 %v448_v27 }
 0x377   :  { %v829_v29 = vpop.f32.mrb[16].mxu0 }
 0x378   :  { %v542_v30 = vadd.f32 %v829_v29, %v611_v28  ;;  %v536_v31 = vpop.f32.mrb[17].mxu0 }
 0x379   :  { %v537_v32 = vadd.f32 %v611_v28, %v536_v31 }
 0x37a   :  { %576 = vst [vmem:[#allocation5 + $0x8] sm:$0xff] %v542_v30 }
 0x37b   :  { %575 = vst [vmem:[#allocation5] sm:$0xff] %v537_v32  ;;  %v832_v33 = vpop.f32.mrb[8].mxu1 }
 0x37c   :  { %v552_v34 = vadd.f32 %v832_v33, %v611_v28  ;;  %v546_v35 = vpop.f32.mrb[9].mxu1 }
 0x37d   :  { %v547_v36 = vadd.f32 %v611_v28, %v546_v35 }
 0x37e   :  { %578 = vst [vmem:[#allocation5 + $0x18] sm:$0xff] %v552_v34 }
 0x37f   :  { %577 = vst [vmem:[#allocation5 + $0x10] sm:$0xff] %v547_v36  ;;  %v835_v37 = vpop.f32.mrb[10].mxu1 }
 0x380   :  { %v562_v38 = vadd.f32 %v835_v37, %v611_v28  ;;  %v556_v39 = vpop.f32.mrb[11].mxu1 }
 0x381   :  { %v557_v40 = vadd.f32 %v611_v28, %v556_v39 }
 0x382   :  { %580 = vst [vmem:[#allocation5 + $0x28] sm:$0xff] %v562_v38 }
 0x383   :  { %579 = vst [vmem:[#allocation5 + $0x20] sm:$0xff] %v557_v40  ;;  %v838_v41 = vpop.f32.mrb[12].mxu1 }
 0x384   :  { %v572_v42 = vadd.f32 %v838_v41, %v611_v28  ;;  %v566_v43 = vpop.f32.mrb[13].mxu1 }
 0x385   :  { %v567_v44 = vadd.f32 %v611_v28, %v566_v43 }
 0x386   :  { %582 = vst [vmem:[#allocation5 + $0x38] sm:$0xff] %v572_v42 }
 0x387   :  { %581 = vst [vmem:[#allocation5 + $0x30] sm:$0xff] %v567_v44 }
 0x388   :  { %988 = shalt.err (!%p985_p12)
}
 0x389   :  { %s989_s27 = scalar_lea.hbm %s1104_s3, 1024 }
 0x38a   :  { %p990_p13 = scmp.ne.s32.totalorder %s1104_s3, %s989_s27  ;;  %p993_p0 = scmp.lt.u32.totalorder %s989_s27, %s1104_s3 }
 0x38c   :  { %p995_p1 = pnand %p993_p0, %p990_p13 }
 0x38e   :  { %998 = shalt.err (!%p995_p1)
}
 0x38f   :  { %594 = dma.vmem_to_hbm [thread:$0]  %s589_s24, 1024, %s1104_s3, [#allocation4], %s1004_s22, %s1004_s22, %s1005_s23  }
 0x390   :  { %1001 = dma.done.wait [#allocation4], 1024  }
 0x391   :  { %1002 = vsyncadd [#allocation4], 4294966272 }
 0x392   :  { %598 = vsyncpa [#allocation3], 1 }
 0x393   :  { %599 = vsyncpa [#allocation4], 1 }

</bundles_post_ra>
